<compile_context>
chip_gen: v5e
topology: v5e:2x2
jax: 0.10.0
libtpu: 0.0.40
codegen_flags: <defaults>
</compile_context>

<pallas_src>
import functools

import jax
import jax.numpy as jnp
from jax.experimental import pallas as pl
from jax.experimental.pallas import tpu as pltpu


def _round_up(x, m):
    return (x + m - 1) // m * m


def _attention_kernel(keys_ref, query_ref, wq_ref, bq_ref, wkt_ref, wv_ref, bv_ref,
                      out_ref, qk_sc, m_sc, l_sc, acc_sc, *, t_total, t_chunk):
    f32 = jnp.float32
    j = pl.program_id(1)

    @pl.when(j == 0)
    def _init():
        m_sc[...] = jnp.full_like(m_sc, -jnp.inf)
        l_sc[...] = jnp.zeros_like(l_sc)
        acc_sc[...] = jnp.zeros_like(acc_sc)
        # Q projection + reassociated score projection (computed once per batch block):
        #   qk = (q @ Wq + bq) @ (scale * Wk^T)      -- K bias dropped (shift-invariant)
        q_proj = (jnp.dot(query_ref[...], wq_ref[...], preferred_element_type=f32)
                  + bq_ref[...].astype(f32))                       # (TB, D_out_p)
        qk_sc[...] = jnp.dot(q_proj.astype(wkt_ref.dtype), wkt_ref[...],
                             preferred_element_type=f32)           # (TB, D_in)

    keys_c = keys_ref[...].astype(f32)                             # (TB, tT, D_in)
    qk = qk_sc[...]                                                # (TB, D_in)

    # scores[b, t] = sum_d keys[b, t, d] * qk[b, d]   (scale already folded into Wk^T)
    scores = jnp.sum(keys_c * qk[:, None, :], axis=-1)             # (TB, tT)

    if t_total % t_chunk != 0:
        # Static tail masking: only traced when T is not a multiple of the T chunk.
        col = jax.lax.broadcasted_iota(jnp.int32, scores.shape, 1) + j * t_chunk
        valid = col < t_total
        scores = jnp.where(valid, scores, -jnp.inf)
        keys_c = jnp.where(valid[:, :, None], keys_c, 0.0)

    # --- Online softmax over T chunks, all state in f32 VMEM scratch. ---
    m_prev = m_sc[...]
    m_new = jnp.maximum(m_prev, jnp.max(scores, axis=-1, keepdims=True))
    alpha = jnp.exp(m_prev - m_new)                                # (TB, 1)
    p = jnp.exp(scores - m_new)                                    # (TB, tT)
    l_sc[...] = alpha * l_sc[...] + jnp.sum(p, axis=-1, keepdims=True)
    acc_sc[...] = alpha * acc_sc[...] + jnp.sum(p[:, :, None] * keys_c, axis=1)
    m_sc[...] = m_new

    @pl.when(j == pl.num_programs(1) - 1)
    def _finalize():
        # attn @ (keys @ Wv + bv) == (attn @ keys) @ Wv + bv   (attn rows sum to 1)
        ctx_keys = acc_sc[...] * pl.reciprocal(l_sc[...], approx=True)   # (TB, D_in)
        ctx = (jnp.dot(ctx_keys.astype(wv_ref.dtype), wv_ref[...],
                       preferred_element_type=f32)
               + bv_ref[...].astype(f32))                          # (TB, D_out_p)
        out_ref[...] = ctx.astype(out_ref.dtype)


def _default_compute_dtype():
    """bf16 matmul operands on v6e / v7x and newer; f32 on v5e and older (no bf16 VPU)."""
    try:
        dev = jax.devices()[0]
        if dev.platform != "tpu":
            return None
        kind = dev.device_kind.lower()
    except Exception:
        return None
    for old in ("v2", "v3", "v4", "v5"):
        if old in kind:
            return None
    return jnp.bfloat16


def attention_pallas(keys, query, wq, bq, wk, bk, wv, bv, *,
                     block_b=128, block_t=None, compute_dtype="auto",
                     vmem_budget_bytes=28 * 1024 * 1024):
    """Forward pass of the LAS Attention module.

    keys: (B, T, D_in), query: (B, D_in), W*: (D_in, D_out), b*: (1, D_out).
    Returns the (B, D_out) context vector (in the input dtype).
    """
    del bk  # Softmax is shift-invariant; the K bias never affects the output.

    B, T, D_in = keys.shape
    D_out = wq.shape[1]
    D_out_p = _round_up(D_out, 128)          # lane-dense output / weight columns (tiny arrays)
    out_dtype = keys.dtype

    if compute_dtype == "auto":
        compute_dtype = _default_compute_dtype()

    scale = 1.0 / (float(D_out) ** 0.5)      # unpadded D_out, as in the module
    wkt = wk.T * scale                       # (D_out, D_in): pre-transposed, scale folded in

    if D_out_p != D_out:                     # pad only tiny weight/bias arrays, never keys
        pad = D_out_p - D_out
        wq = jnp.pad(wq, ((0, 0), (0, pad)))
        wv = jnp.pad(wv, ((0, 0), (0, pad)))
        wkt = jnp.pad(wkt, ((0, pad), (0, 0)))
        bq = jnp.pad(bq, ((0, 0), (0, pad)))
        bv = jnp.pad(bv, ((0, 0), (0, pad)))

    if compute_dtype is not None:
        # In a real LAS decoder, cast keys once and reuse across decode steps.
        keys = keys.astype(compute_dtype)
        query = query.astype(compute_dtype)
        wq = wq.astype(compute_dtype)
        wkt = wkt.astype(compute_dtype)
        wv = wv.astype(compute_dtype)
    # Biases stay f32; they are added in f32 inside the kernel.

    isz = jnp.dtype(keys.dtype).itemsize

    # --- Batch block: no batch padding; >=2 grid steps when B allows; multiple of 8. ---
    if B <= 8:
        TB = B                               # block dim == full array dim (legal)
    else:
        TB = min(block_b, B)
        if B >= 16:
            TB = min(TB, _round_up(pl.cdiv(B, 2), 8))
        TB = max(8, (TB // 8) * 8)

    # --- T chunk: keys double-buffer must fit the (v7x-safe) VMEM budget. ---
    keys_buf_budget = max(vmem_budget_bytes // 3, 1 << 20)
    if block_t is not None:
        tT = min(block_t, T)
    elif TB * T * D_in * isz <= keys_buf_budget:
        tT = T
    else:
        tT = min(T, max(8, (keys_buf_budget // (TB * D_in * isz)) // 8 * 8))
    if tT < T:
        tT = max(8, (tT // 8) * 8)

    nb = pl.cdiv(B, TB)
    nt = pl.cdiv(T, tT)

    # --- VMEM limit derived from actual (double-buffered) block sizes + slack. ---
    w_isz = jnp.dtype(wq.dtype).itemsize
    bytes_keys = 2 * TB * tT * D_in * isz
    bytes_q = 2 * TB * D_in * isz
    bytes_out = 2 * TB * D_out_p * jnp.dtype(out_dtype).itemsize
    bytes_w = 2 * (2 * D_in * D_out_p * w_isz + D_out_p * D_in * w_isz + 2 * D_out_p * 4)
    bytes_scr = TB * (2 * D_in + 2) * 4
    vmem_limit = int(1.5 * (bytes_keys + bytes_q + bytes_out + bytes_w + bytes_scr)) + (6 << 20)
    vmem_limit = min(max(vmem_limit, 16 << 20), 96 << 20)

    kernel = functools.partial(_attention_kernel, t_total=T, t_chunk=tT)

    out = pl.pallas_call(
        kernel,
        out_shape=jax.ShapeDtypeStruct((B, D_out_p), out_dtype),
        grid=(nb, nt),
        in_specs=[
            pl.BlockSpec((TB, tT, D_in), lambda i, j: (i, j, 0)),   # keys chunk (un-padded D_in)
            pl.BlockSpec((TB, D_in), lambda i, j: (i, 0)),          # query block
            pl.BlockSpec((D_in, D_out_p), lambda i, j: (0, 0)),     # Wq
            pl.BlockSpec((1, D_out_p), lambda i, j: (0, 0)),        # bq
            pl.BlockSpec((D_out_p, D_in), lambda i, j: (0, 0)),     # scale * Wk^T
            pl.BlockSpec((D_in, D_out_p), lambda i, j: (0, 0)),     # Wv
            pl.BlockSpec((1, D_out_p), lambda i, j: (0, 0)),        # bv
        ],
        out_specs=pl.BlockSpec((TB, D_out_p), lambda i, j: (i, 0)),
        scratch_shapes=[
            pltpu.VMEM((TB, D_in), jnp.float32),   # qk = (q@Wq+bq) @ (scale*Wk^T)
            pltpu.VMEM((TB, 1), jnp.float32),      # running max
            pltpu.VMEM((TB, 1), jnp.float32),      # running softmax denominator
            pltpu.VMEM((TB, D_in), jnp.float32),   # attn-weighted key sum
        ],
        compiler_params=pltpu.CompilerParams(
            dimension_semantics=("parallel", "arbitrary"),
            vmem_limit_bytes=vmem_limit,
        ),
    )(keys, query, wq, bq, wkt, wv, bv)

    return out[:, :D_out] if D_out_p != D_out else out


def attention_reference(keys, query, wq, bq, wk, bk, wv, bv):
    # Pure-JAX reference matching the PyTorch module semantics exactly.
    q_proj = (query @ wq + bq[0])[:, None, :]                 # (B, 1, D_out)
    k_proj = jnp.einsum("btd,de->bte", keys, wk) + bk[0]      # (B, T, D_out)
    v_proj = jnp.einsum("btd,de->bte", keys, wv) + bv[0]      # (B, T, D_out)
    scores = jnp.einsum("bqe,bte->bqt", q_proj, k_proj) / (k_proj.shape[-1] ** 0.5)
    attn = jax.nn.softmax(scores, axis=-1)
    return jnp.einsum("bqt,bte->bqe", attn, v_proj)[:, 0, :]


if __name__ == "__main__":
    # Small shapes consistent with the module's forward signature.
    B, T, D_in, D_out = 2, 8, 32, 32

    key = jax.random.PRNGKey(0)
    k_keys, k_query, k_wq, k_bq, k_wk, k_bk, k_wv, k_bv = jax.random.split(key, 8)

    keys = jax.random.normal(k_keys, (B, T, D_in), dtype=jnp.float32)
    query = jax.random.normal(k_query, (B, D_in), dtype=jnp.float32)

    # Deterministic parameter init (synthetic; shapes from nn.Linear(input_dim, output_dim)).
    init_scale = 1.0 / (D_in ** 0.5)
    wq = jax.random.uniform(k_wq, (D_in, D_out), jnp.float32, -init_scale, init_scale)
    bq = jax.random.uniform(k_bq, (1, D_out), jnp.float32, -init_scale, init_scale)
    wk = jax.random.uniform(k_wk, (D_in, D_out), jnp.float32, -init_scale, init_scale)
    bk = jax.random.uniform(k_bk, (1, D_out), jnp.float32, -init_scale, init_scale)
    wv = jax.random.uniform(k_wv, (D_in, D_out), jnp.float32, -init_scale, init_scale)
    bv = jax.random.uniform(k_bv, (1, D_out), jnp.float32, -init_scale, init_scale)

    ref = attention_reference(keys, query, wq, bq, wk, bk, wv, bv)

    # Strict check: full-f32 compute path (covers reassociation + approx reciprocal).
    out_f32 = attention_pallas(keys, query, wq, bq, wk, bk, wv, bv, compute_dtype=None)
    out_f32 = jax.block_until_ready(out_f32)
    assert out_f32.shape == (B, D_out)
    assert jnp.allclose(out_f32, ref, atol=1e-3, rtol=1e-3), "f32 mismatch vs reference"

    # Default (chip-aware) path: bf16 matmul operands on v6e/v7x, f32 on v5e and older.
    out_auto = attention_pallas(keys, query, wq, bq, wk, bk, wv, bv)
    out_auto = jax.block_until_ready(out_auto)
    assert out_auto.shape == (B, D_out)
    assert jnp.allclose(out_auto, ref, atol=5e-2, rtol=5e-2), "auto-dtype mismatch vs reference"

    print("KERNEL_OK")
</pallas_src>

<mosaic_0001>
module attributes {stable_mosaic.version = 11 : i64} {
  func.func @_attention_kernel(%arg0: i32, %arg1: i32, %arg2: memref<2x8x32xf32, #tpu.memory_space<vmem>>, %arg3: memref<2x32xf32, #tpu.memory_space<vmem>>, %arg4: memref<32x128xf32, #tpu.memory_space<vmem>>, %arg5: memref<1x128xf32, #tpu.memory_space<vmem>>, %arg6: memref<128x32xf32, #tpu.memory_space<vmem>>, %arg7: memref<32x128xf32, #tpu.memory_space<vmem>>, %arg8: memref<1x128xf32, #tpu.memory_space<vmem>>, %arg9: memref<2x128xf32, #tpu.memory_space<vmem>>, %arg10: memref<2x32xf32, #tpu.memory_space<vmem>>, %arg11: memref<2x1xf32, #tpu.memory_space<vmem>>, %arg12: memref<2x1xf32, #tpu.memory_space<vmem>>, %arg13: memref<2x32xf32, #tpu.memory_space<vmem>>) attributes {dimension_semantics = [#tpu.dimension_semantics<parallel>, #tpu.dimension_semantics<arbitrary>], iteration_bounds = array<i64: 1, 1>, scalar_prefetch = 0 : i64, scratch_operands = 4 : i64, tpu.core_type = #tpu.core_type<tc>, window_params = [{transform_indices = @transform_0, window_bounds = array<i64: 2, 8, 32>}, {transform_indices = @transform_1, window_bounds = array<i64: 2, 32>}, {pipeline_mode = #tpu.pipeline_mode<synchronous>, transform_indices = @transform_2, window_bounds = array<i64: 32, 128>}, {pipeline_mode = #tpu.pipeline_mode<synchronous>, transform_indices = @transform_3, window_bounds = array<i64: 1, 128>}, {pipeline_mode = #tpu.pipeline_mode<synchronous>, transform_indices = @transform_4, window_bounds = array<i64: 128, 32>}, {pipeline_mode = #tpu.pipeline_mode<synchronous>, transform_indices = @transform_5, window_bounds = array<i64: 32, 128>}, {pipeline_mode = #tpu.pipeline_mode<synchronous>, transform_indices = @transform_6, window_bounds = array<i64: 1, 128>}, {transform_indices = @transform_7, window_bounds = array<i64: 2, 128>}]} {
    %c0_i32 = arith.constant 0 : i32
    %0 = arith.cmpi eq, %arg1, %c0_i32 : i32
    %1 = arith.extui %0 : i1 to i32
    %c0_i32_0 = arith.constant 0 : i32
    %2 = arith.cmpi ne, %1, %c0_i32_0 : i32
    scf.if %2 {
      %cst_22 = arith.constant 0xFF800000 : f32
      %37 = vector.broadcast %cst_22 : f32 to vector<2x1xf32>
      %c0_23 = arith.constant 0 : index
      %c0_24 = arith.constant 0 : index
      %38 = vector.load %arg11[%c0_23, %c0_24] : memref<2x1xf32, #tpu.memory_space<vmem>>, vector<2x1xf32>
      tpu.vector_store %arg11[%c0_23, %c0_24], %37 {strides = array<i32>} : memref<2x1xf32, #tpu.memory_space<vmem>>, vector<2x1xf32>,
      %cst_25 = arith.constant 0.000000e+00 : f32
      %39 = vector.broadcast %cst_25 : f32 to vector<2x1xf32>
      %c0_26 = arith.constant 0 : index
      %c0_27 = arith.constant 0 : index
      %40 = vector.load %arg12[%c0_26, %c0_27] : memref<2x1xf32, #tpu.memory_space<vmem>>, vector<2x1xf32>
      tpu.vector_store %arg12[%c0_26, %c0_27], %39 {strides = array<i32>} : memref<2x1xf32, #tpu.memory_space<vmem>>, vector<2x1xf32>,
      %cst_28 = arith.constant 0.000000e+00 : f32
      %41 = vector.broadcast %cst_28 : f32 to vector<2x32xf32>
      %c0_29 = arith.constant 0 : index
      %c0_30 = arith.constant 0 : index
      %42 = vector.load %arg13[%c0_29, %c0_30] : memref<2x32xf32, #tpu.memory_space<vmem>>, vector<2x32xf32>
      tpu.vector_store %arg13[%c0_29, %c0_30], %41 {strides = array<i32>} : memref<2x32xf32, #tpu.memory_space<vmem>>, vector<2x32xf32>,
      %c0_31 = arith.constant 0 : index
      %c0_32 = arith.constant 0 : index
      %43 = vector.load %arg3[%c0_31, %c0_32] : memref<2x32xf32, #tpu.memory_space<vmem>>, vector<2x32xf32>
      %c0_33 = arith.constant 0 : index
      %c0_34 = arith.constant 0 : index
      %44 = vector.load %arg4[%c0_33, %c0_34] : memref<32x128xf32, #tpu.memory_space<vmem>>, vector<32x128xf32>
      %cst_35 = arith.constant dense<0.000000e+00> : vector<2x128xf32>
      %45 = tpu.matmul %43, %44, %cst_35 {dimension_numbers = #tpu.dot_dimension_numbers<[1], [0], [0], [1], [0, 0, 1, 1], [], []>} : vector<2x32xf32>, vector<32x128xf32>, vector<2x128xf32> -> vector<2x128xf32>
      %c0_36 = arith.constant 0 : index
      %c0_37 = arith.constant 0 : index
      %46 = vector.load %arg5[%c0_36, %c0_37] : memref<1x128xf32, #tpu.memory_space<vmem>>, vector<1x128xf32>
      %47 = vector.broadcast %46 : vector<1x128xf32> to vector<2x128xf32>
      %48 = arith.addf %45, %47 : vector<2x128xf32>
      %c0_38 = arith.constant 0 : index
      %c0_39 = arith.constant 0 : index
      %49 = vector.load %arg6[%c0_38, %c0_39] : memref<128x32xf32, #tpu.memory_space<vmem>>, vector<128x32xf32>
      %cst_40 = arith.constant dense<0.000000e+00> : vector<2x32xf32>
      %50 = tpu.matmul %48, %49, %cst_40 {dimension_numbers = #tpu.dot_dimension_numbers<[1], [0], [0], [1], [0, 0, 1, 1], [], []>} : vector<2x128xf32>, vector<128x32xf32>, vector<2x32xf32> -> vector<2x32xf32>
      %c0_41 = arith.constant 0 : index
      %c0_42 = arith.constant 0 : index
      %51 = vector.load %arg10[%c0_41, %c0_42] : memref<2x32xf32, #tpu.memory_space<vmem>>, vector<2x32xf32>
      tpu.vector_store %arg10[%c0_41, %c0_42], %50 {strides = array<i32>} : memref<2x32xf32, #tpu.memory_space<vmem>>, vector<2x32xf32>,
    } else {
    }
    %c0 = arith.constant 0 : index
    %c0_1 = arith.constant 0 : index
    %c0_2 = arith.constant 0 : index
    %3 = vector.load %arg2[%c0, %c0_1, %c0_2] : memref<2x8x32xf32, #tpu.memory_space<vmem>>, vector<2x8x32xf32>
    %c0_3 = arith.constant 0 : index
    %c0_4 = arith.constant 0 : index
    %4 = vector.load %arg10[%c0_3, %c0_4] : memref<2x32xf32, #tpu.memory_space<vmem>>, vector<2x32xf32>
    %5 = vector.shape_cast %4 : vector<2x32xf32> to vector<2x1x32xf32>
    %6 = vector.broadcast %5 : vector<2x1x32xf32> to vector<2x8x32xf32>
    %7 = arith.mulf %3, %6 : vector<2x8x32xf32>
    %cst = arith.constant dense<0.000000e+00> : vector<2x8xf32>
    %8 = vector.multi_reduction <add>, %7, %cst [2] : vector<2x8x32xf32> to vector<2x8xf32>
    %c0_5 = arith.constant 0 : index
    %c0_6 = arith.constant 0 : index
    %9 = vector.load %arg11[%c0_5, %c0_6] : memref<2x1xf32, #tpu.memory_space<vmem>>, vector<2x1xf32>
    %cst_7 = arith.constant dense<0xFF800000> : vector<2xf32>
    %10 = vector.multi_reduction <maximumf>, %8, %cst_7 [1] : vector<2x8xf32> to vector<2xf32>
    %11 = vector.shape_cast %10 : vector<2xf32> to vector<2x1xf32>
    %12 = arith.maximumf %9, %11 : vector<2x1xf32>
    %13 = arith.subf %9, %12 : vector<2x1xf32>
    %14 = math.exp %13 : vector<2x1xf32>
    %15 = vector.broadcast %12 : vector<2x1xf32> to vector<2x8xf32>
    %16 = arith.subf %8, %15 : vector<2x8xf32>
    %17 = math.exp %16 : vector<2x8xf32>
    %c0_8 = arith.constant 0 : index
    %c0_9 = arith.constant 0 : index
    %18 = vector.load %arg12[%c0_8, %c0_9] : memref<2x1xf32, #tpu.memory_space<vmem>>, vector<2x1xf32>
    %19 = arith.mulf %14, %18 : vector<2x1xf32>
    %cst_10 = arith.constant dense<0.000000e+00> : vector<2xf32>
    %20 = vector.multi_reduction <add>, %17, %cst_10 [1] : vector<2x8xf32> to vector<2xf32>
    %21 = vector.shape_cast %20 : vector<2xf32> to vector<2x1xf32>
    %22 = arith.addf %19, %21 : vector<2x1xf32>
    %c0_11 = arith.constant 0 : index
    %c0_12 = arith.constant 0 : index
    %23 = vector.load %arg12[%c0_11, %c0_12] : memref<2x1xf32, #tpu.memory_space<vmem>>, vector<2x1xf32>
    tpu.vector_store %arg12[%c0_11, %c0_12], %22 {strides = array<i32>} : memref<2x1xf32, #tpu.memory_space<vmem>>, vector<2x1xf32>,
    %c0_13 = arith.constant 0 : index
    %c0_14 = arith.constant 0 : index
    %24 = vector.load %arg13[%c0_13, %c0_14] : memref<2x32xf32, #tpu.memory_space<vmem>>, vector<2x32xf32>
    %25 = vector.broadcast %14 : vector<2x1xf32> to vector<2x32xf32>
    %26 = arith.mulf %25, %24 : vector<2x32xf32>
    %27 = vector.shape_cast %17 : vector<2x8xf32> to vector<2x8x1xf32>
    %28 = vector.broadcast %27 : vector<2x8x1xf32> to vector<2x8x32xf32>
    %29 = arith.mulf %28, %3 : vector<2x8x32xf32>
    %cst_15 = arith.constant dense<0.000000e+00> : vector<2x32xf32>
    %30 = vector.multi_reduction <add>, %29, %cst_15 [1] : vector<2x8x32xf32> to vector<2x32xf32>
    %31 = arith.addf %26, %30 : vector<2x32xf32>
    %c0_16 = arith.constant 0 : index
    %c0_17 = arith.constant 0 : index
    %32 = vector.load %arg13[%c0_16, %c0_17] : memref<2x32xf32, #tpu.memory_space<vmem>>, vector<2x32xf32>
    tpu.vector_store %arg13[%c0_16, %c0_17], %31 {strides = array<i32>} : memref<2x32xf32, #tpu.memory_space<vmem>>, vector<2x32xf32>,
    %c0_18 = arith.constant 0 : index
    %c0_19 = arith.constant 0 : index
    %33 = vector.load %arg11[%c0_18, %c0_19] : memref<2x1xf32, #tpu.memory_space<vmem>>, vector<2x1xf32>
    tpu.vector_store %arg11[%c0_18, %c0_19], %12 {strides = array<i32>} : memref<2x1xf32, #tpu.memory_space<vmem>>, vector<2x1xf32>,
    %c0_i32_20 = arith.constant 0 : i32
    %34 = arith.cmpi eq, %arg1, %c0_i32_20 : i32
    %35 = arith.extui %34 : i1 to i32
    %c0_i32_21 = arith.constant 0 : i32
    %36 = arith.cmpi ne, %35, %c0_i32_21 : i32
    scf.if %36 {
      %c0_22 = arith.constant 0 : index
      %c0_23 = arith.constant 0 : index
      %37 = vector.load %arg13[%c0_22, %c0_23] : memref<2x32xf32, #tpu.memory_space<vmem>>, vector<2x32xf32>
      %c0_24 = arith.constant 0 : index
      %c0_25 = arith.constant 0 : index
      %38 = vector.load %arg12[%c0_24, %c0_25] : memref<2x1xf32, #tpu.memory_space<vmem>>, vector<2x1xf32>
      %39 = tpu.reciprocal %38 {approx = true} : vector<2x1xf32> -> vector<2x1xf32>
      %40 = vector.broadcast %39 : vector<2x1xf32> to vector<2x32xf32>
      %41 = arith.mulf %37, %40 : vector<2x32xf32>
      %c0_26 = arith.constant 0 : index
      %c0_27 = arith.constant 0 : index
      %42 = vector.load %arg7[%c0_26, %c0_27] : memref<32x128xf32, #tpu.memory_space<vmem>>, vector<32x128xf32>
      %cst_28 = arith.constant dense<0.000000e+00> : vector<2x128xf32>
      %43 = tpu.matmul %41, %42, %cst_28 {dimension_numbers = #tpu.dot_dimension_numbers<[1], [0], [0], [1], [0, 0, 1, 1], [], []>} : vector<2x32xf32>, vector<32x128xf32>, vector<2x128xf32> -> vector<2x128xf32>
      %c0_29 = arith.constant 0 : index
      %c0_30 = arith.constant 0 : index
      %44 = vector.load %arg8[%c0_29, %c0_30] : memref<1x128xf32, #tpu.memory_space<vmem>>, vector<1x128xf32>
      %45 = vector.broadcast %44 : vector<1x128xf32> to vector<2x128xf32>
      %46 = arith.addf %43, %45 : vector<2x128xf32>
      %c0_31 = arith.constant 0 : index
      %c0_32 = arith.constant 0 : index
      %47 = vector.load %arg9[%c0_31, %c0_32] : memref<2x128xf32, #tpu.memory_space<vmem>>, vector<2x128xf32>
      tpu.vector_store %arg9[%c0_31, %c0_32], %46 {strides = array<i32>} : memref<2x128xf32, #tpu.memory_space<vmem>>, vector<2x128xf32>,
    } else {
    }
    return
  }
  func.func @transform_0(%arg0: i32, %arg1: i32) -> (i32, i32, i32) {
    %c0_i32 = arith.constant 0 : i32
    %c0_i32_0 = arith.constant 0 : i32
    return %arg0, %arg1, %c0_i32 : i32, i32, i32
  }
  func.func @transform_1(%arg0: i32, %arg1: i32) -> (i32, i32) {
    %c0_i32 = arith.constant 0 : i32
    %c0_i32_0 = arith.constant 0 : i32
    return %arg0, %c0_i32 : i32, i32
  }
  func.func @transform_2(%arg0: i32, %arg1: i32) -> (i32, i32) {
    %c0_i32 = arith.constant 0 : i32
    %c0_i32_0 = arith.constant 0 : i32
    %c0_i32_1 = arith.constant 0 : i32
    return %c0_i32, %c0_i32_0 : i32, i32
  }
  func.func @transform_3(%arg0: i32, %arg1: i32) -> (i32, i32) {
    %c0_i32 = arith.constant 0 : i32
    %c0_i32_0 = arith.constant 0 : i32
    %c0_i32_1 = arith.constant 0 : i32
    return %c0_i32, %c0_i32_0 : i32, i32
  }
  func.func @transform_4(%arg0: i32, %arg1: i32) -> (i32, i32) {
    %c0_i32 = arith.constant 0 : i32
    %c0_i32_0 = arith.constant 0 : i32
    %c0_i32_1 = arith.constant 0 : i32
    return %c0_i32, %c0_i32_0 : i32, i32
  }
  func.func @transform_5(%arg0: i32, %arg1: i32) -> (i32, i32) {
    %c0_i32 = arith.constant 0 : i32
    %c0_i32_0 = arith.constant 0 : i32
    %c0_i32_1 = arith.constant 0 : i32
    return %c0_i32, %c0_i32_0 : i32, i32
  }
  func.func @transform_6(%arg0: i32, %arg1: i32) -> (i32, i32) {
    %c0_i32 = arith.constant 0 : i32
    %c0_i32_0 = arith.constant 0 : i32
    %c0_i32_1 = arith.constant 0 : i32
    return %c0_i32, %c0_i32_0 : i32, i32
  }
  func.func @transform_7(%arg0: i32, %arg1: i32) -> (i32, i32) {
    %c0_i32 = arith.constant 0 : i32
    %c0_i32_0 = arith.constant 0 : i32
    return %arg0, %c0_i32 : i32, i32
  }
}

</mosaic_0001>

<bundles_post_ra>
// kernel: tpu_custom_call.1
= control target key start
LH: loop header
LB: loop body
LE: loop exit
PB: predicated region body
PF: predicated region fallthrough
CT: control target
= control target key end

     0   :  { %vm45_vm0 = vcmask 261120   ;;  %s466_s0 = inlined_call_operand.vmem [shape: f32[2,8,32], index: 0, kind: input, shape index: {}]   ;;  %s467_s1 = inlined_call_operand.vmem [shape: f32[2,32], index: 1, kind: input, shape index: {}]   ;;  %s468_s2 = inlined_call_operand.vmem [shape: f32[32,128], index: 2, kind: input, shape index: {}]   ;;  %s469_s3 = inlined_call_operand.vmem [shape: f32[1,128], index: 3, kind: input, shape index: {}]   ;;  %s470_s4 = inlined_call_operand.vmem [shape: f32[128,32], index: 4, kind: input, shape index: {}]   ;;  %s471_s5 = inlined_call_operand.vmem [shape: f32[32,128], index: 5, kind: input, shape index: {}]   ;;  %s472_s6 = inlined_call_operand.vmem [shape: f32[1,128], index: 6, kind: input, shape index: {}]   ;;  %s473_s7 = inlined_call_operand.hbm [shape: f32[2,128], index: 7, kind: output, shape index: {}]  }
   0x1   :  { %v40_v0 = vld [vmem:[%s468_s2 + $0x18] sm:$0xff]  ;;  %v39_v1 = vld [vmem:[%s468_s2 + $0x10] sm:$0xff]  ;;  %v38_v3 = vld [vmem:[%s468_s2 + $0x8] sm:$0xff] }
   0x2   :  { %61 = vmatpush.msra.mxu0 %v40_v0  ;;  %v84_v2 = vld [vmem:[%s470_s4 + $0x78] sm:$0xff]  ;;  %v83_v4 = vld [vmem:[%s470_s4 + $0x70] sm:$0xff]  ;;  %v82_v5 = vld [vmem:[%s470_s4 + $0x68] sm:$0xff] }
   0x3   :  { %85 = vmatpush.msra.mxu1 %v84_v2  ;;  %v37_v6 = vld [vmem:[%s468_s2] sm:$0xff]  ;;  %v80_v9 = vld [vmem:[%s470_s4 + $0x58] sm:$0xff] }
   0x4   :  { %62 = vmatpush.msra.mxu0 %v39_v1  ;;  %v36_v7 = vld [vmem:[%s467_s1] sm:$0x3] }
   0x5   :  { %86 = vmatpush.msra.mxu1 %v83_v4  ;;  %v81_v8 = vld [vmem:[%s470_s4 + $0x60] sm:$0xff] }
   0x6   :  { %63 = vmatpush.msra.mxu0 %v38_v3 }
   0x7   :  { %87 = vmatpush.msra.mxu1 %v82_v5 }
   0x8   :  { %64 = vmatpush.msra.mxu0 %v37_v6 }
   0x9   :  { %12 = vsyncpa [#allocation7], 0  ;;  %269 = vmatmul.msk.f32.vlgmr.msra.gmra.mxu0 %vm45_vm0, %v36_v7  ;;  %88 = vmatpush.msra.mxu1 %v81_v8  ;;  %v79_v10 = vld [vmem:[%s470_s4 + $0x50] sm:$0xff]  ;;  %v78_v11 = vld [vmem:[%s470_s4 + $0x48] sm:$0xff]  ;;  %vm31_vm1 = vcmask 1024   ;;  %v314_v21 = vmov 0.0   ;;  %v127_v37 = vlaneseq }
   0xa   :  { %v77_v12 = vld [vmem:[%s470_s4 + $0x40] sm:$0xff]  ;;  %v76_v13 = vld [vmem:[%s470_s4 + $0x38] sm:$0xff]  ;;  %v75_v14 = vld [vmem:[%s470_s4 + $0x30] sm:$0xff]  ;;  %33 = vst.msk [vmem:[#allocation4] sm:$0x3] %vm31_vm1, %v314_v21  ;;  %vm34_vm2 = vcmask 254976  }
   0xb   :  { %89 = vmatpush.msra.mxu1 %v80_v9  ;;  %v74_v15 = vld [vmem:[%s470_s4 + $0x28] sm:$0xff]  ;;  %v73_v16 = vld [vmem:[%s470_s4 + $0x20] sm:$0xff]  ;;  %v72_v17 = vld [vmem:[%s470_s4 + $0x18] sm:$0xff]  ;;  %35 = vst.msk [vmem:[#allocation5] sm:$0x3] %vm34_vm2, %v314_v21  ;;  %v128_v38 = vand.u32 127, %v127_v37 }
   0xc   :  { %v71_v18 = vld [vmem:[%s470_s4 + $0x10] sm:$0xff]  ;;  %v70_v19 = vld [vmem:[%s470_s4 + $0x8] sm:$0xff]  ;;  %v69_v20 = vld [vmem:[%s470_s4] sm:$0xff]  ;;  %vm131_vm3 = vcmask 1041409   ;;  %vm134_vm4 = vcmask 58368   ;;  %v315_v44 = vmov -inf  }
   0xd   :  { %90 = vmatpush.msra.mxu1 %v79_v10  ;;  %v278_v22 = vld [vmem:[%s469_s3] ss:$0 sm:$0xff]  ;;  %v107_v33 = vld [vmem:[%s466_s0 + $0x8] sm:$0xff]  ;;  %32 = vst.msk [vmem:[#allocation3] sm:$0x3] %vm31_vm1, %v315_v44  ;;  %v316_v45 = vmov 0  }
   0xe   :  { %v106_v26 = vld [vmem:[%s466_s0] sm:$0xff]  ;;  %275 = vset.pattern.permute.xlu1 %v316_v45  ;;  %276 = vset.pattern.permute.xlu2 %v316_v45  ;;  %s317_s29 = smov [#allocation6]   ;;  %s260_s10 = sshll.u32 %s473_s7, 4  ;;  %s261_s10 = int_to_ptr.hbm [resolvable:$true] %s260_s10 }
   0xf   :  { %91 = vmatpush.msra.mxu1 %v78_v11  ;;  %277 = vset.pattern.permute.xlu0 %v316_v45  ;;  %v279_v37 = vld [vmem:[%s472_s6] ss:$0 sm:$0xff]  ;;  %s258_s30 = sshll.u32 %s317_s29, 4  ;;  %s259_s30 = int_to_ptr.vmem [resolvable:$true] %s258_s30 }
  0x11   :  { %92 = vmatpush.msra.mxu1 %v77_v12 }
  0x13   :  { %93 = vmatpush.msra.mxu1 %v76_v13 }
  0x14   :  { %v124_v46 = vld [vmem:[#allocation3] sm:$0x3] }
  0x15   :  { %94 = vmatpush.msra.mxu1 %v75_v14 }
  0x17   :  { %95 = vmatpush.msra.mxu1 %v74_v15 }
  0x19   :  { %96 = vmatpush.msra.mxu1 %v73_v16 }
  0x1b   :  { %97 = vmatpush.msra.mxu1 %v72_v17  ;;  %v176_v17 = vld [vmem:[#allocation5] sm:$0x3] }
  0x1d   :  { %98 = vmatpush.msra.mxu1 %v71_v18 }
  0x1f   :  { %99 = vmatpush.msra.mxu1 %v70_v19 }
  0x21   :  { %100 = vmatpush.msra.mxu1 %v69_v20 }
  0x86   :  { %v66_v23 = vpop.f32.mrf.mxu0 }
  0x87   :  { %v67_v24 = vadd.f32 %v278_v22, %v66_v23 }
  0x89   :  { %101 = vmatmul.f32.vlgmr.msra.gmra.mxu1 %v67_v24  ;;  %v224_v24 = vld [vmem:[%s471_s5 + $0x18] sm:$0xff] }
  0x8a   :  { %244 = vmatpush.msra.mxu2 %v224_v24 }
 0x106   :  { %v102_v25 = vpop.f32.mrf.mxu1 }
 0x107   :  { %105 = vst.msk [vmem:[#allocation2] sm:$0x3] %vm34_vm2, %v102_v25  ;;  %v223_v25 = vld [vmem:[%s471_s5 + $0x10] sm:$0xff] }
 0x108   :  { %245 = vmatpush.msra.mxu2 %v223_v25 }
 0x10e   :  { %v108_v27 = vld [vmem:[#allocation2] sm:$0x3] }
 0x10f   :  { %v111_v28 = vperm.slane %v108_v27, 0  ;;  %v110_v29 = vrot.slane %v108_v27, 1  ;;  %v156_v27 = vld [vmem:[#allocation4] sm:$0x3] }
 0x111   :  { %v115_v30 = vmul.f32 %v111_v28, %v106_v26  ;;  %v112_v32 = vperm.slane %v110_v29, 0 }
 0x113   :  { %v118_v31 = vsel %vm45_vm0, %v115_v30, 0.0  ;;  %v116_v34 = vmul.f32 %v112_v32, %v107_v33 }
 0x114   :  { %119 = vadd.xlane.f32.xlu0 %v118_v31 }
 0x115   :  { %v121_v35 = vsel %vm45_vm0, %v116_v34, 0.0 }
 0x11c   :  { %122 = vadd.xlane.f32.xlu0 %v121_v35 }
 0x187   :  { %v120_v36 = vpop.xlane.xlu0 %119 }
 0x188   :  { %v129_v40 = vperm.slane %v120_v36, %v128_v38 }
 0x18f   :  { %v123_v39 = vpop.xlane.xlu0 %122 }
 0x190   :  { %v130_v41 = vperm.slane %v123_v39, %v128_v38 }
 0x192   :  { %v132_v42 = vsel %vm131_vm3, %v130_v41, %v129_v40 }
 0x193   :  { %v135_v43 = vsel %vm134_vm4, %v132_v42, -inf }
 0x194   :  { %136 = vmax.xlane.f32.xlu1 %v135_v43 }
 0x207   :  { %v137_v47 = vpop.xlane.xlu1 %136 }
 0x208   :  { %v138_v48 = vmax.f32 %v124_v46, %v137_v47 }
 0x20a   :  { %v139_v49 = vsub.f32 %v124_v46, %v138_v48  ;;  %208 = vst.msk [vmem:[#allocation3] sm:$0x3] %vm31_vm1, %v138_v48  ;;  %144 = vperm.xlu1 %275, %v138_v48  }
 0x20c   :  { %v140_v58 = vmul.f32 1.442695, %v139_v49 }
 0x27c   :  { %v145_v50 = vpop.permute.xlu1 %144 }
 0x27d   :  { %v146_v51 = vperm.slane %v145_v50, 0  ;;  %v147_v52 = vperm.slane %v145_v50, 1 }
 0x27f   :  { %v150_v53 = vsub.f32 %v120_v36, %v146_v51  ;;  %v151_v55 = vsub.f32 %v123_v39, %v147_v52 }
 0x281   :  { %v152_v54 = vmul.f32 1.442695, %v150_v53  ;;  %v154_v56 = vmul.f32 1.442695, %v151_v55 }
 0x283   :  { %280 = vpow2.f32 %v152_v54 }
 0x284   :  { %282 = vpow2.f32 %v154_v56 }
 0x285   :  { %284 = vpow2.f32 %v140_v58 }
 0x289   :  { %v281_v57 = vpop.eup %280 }
 0x28a   :  { %161 = vperm.xlu2 %276, %v281_v57   ;;  %v283_v59 = vpop.eup %282 }
 0x28b   :  { %v285_v60 = vpop.eup %284 }
 0x28c   :  { %v157_v28 = vmul.f32 %v285_v60, %v156_v27 }
 0x292   :  { %164 = vperm.xlu2 %276, %v283_v59  }
 0x29a   :  { %179 = vperm.xlu2 %276, %v285_v60  }
 0x2e4   :  { %v162_v61 = vpop.permute.xlu2 %161 }
 0x2e5   :  { %v185_v62 = vmul.f32 %v162_v61, %v106_v26  ;;  %v166_v3 = vperm.slane %v162_v61, %v128_v38  ;;  %v222_v26 = vld [vmem:[%s471_s5 + $0x8] sm:$0xff] }
 0x2e6   :  { %246 = vmatpush.msra.mxu2 %v222_v26 }
 0x2e7   :  { %v187_v63 = vsel %vm45_vm0, %v185_v62, 0.0 }
 0x2e8   :  { %v188_v0 = vrot.slane %v187_v63, 4 }
 0x2ea   :  { %v189_v1 = vadd.f32 %v188_v0, %v187_v63 }
 0x2ec   :  { %v165_v2 = vpop.permute.xlu2 %164  ;;  %v190_v6 = vrot.slane %v189_v1, 2 }
 0x2ed   :  { %v167_v4 = vperm.slane %v165_v2, %v128_v38  ;;  %v186_v5 = vmul.f32 %v165_v2, %v107_v33  ;;  %v221_v33 = vld [vmem:[%s471_s5] sm:$0xff] }
 0x2ee   :  { %v191_v11 = vadd.f32 %v190_v6, %v189_v1  ;;  %247 = vmatpush.msra.mxu2 %v221_v33 }
 0x2ef   :  { %v194_v7 = vsel %vm45_vm0, %v186_v5, 0.0  ;;  %v168_v8 = vsel %vm131_vm3, %v167_v4, %v166_v3 }
 0x2f0   :  { %v195_v9 = vrot.slane %v194_v7, 4  ;;  %v170_v10 = vsel %vm134_vm4, %v168_v8, 0.0  ;;  %v192_v14 = vrot.slane %v191_v11, 1 }
 0x2f1   :  { %171 = vadd.xlane.f32.xlu0 %v170_v10 }
 0x2f2   :  { %v196_v12 = vadd.f32 %v195_v9, %v194_v7  ;;  %v193_v19 = vadd.f32 %v192_v14, %v191_v11 }
 0x2f4   :  { %v197_v13 = vrot.slane %v196_v12, 2  ;;  %v180_v18 = vpop.permute.xlu2 %179 }
 0x2f5   :  { %v182_v21 = vmul.f32 %v180_v18, %v176_v17 }
 0x2f6   :  { %v198_v15 = vadd.f32 %v197_v13, %v196_v12 }
 0x2f8   :  { %v199_v16 = vrot.slane %v198_v15, 1 }
 0x2fa   :  { %v200_v20 = vadd.f32 %v199_v16, %v198_v15 }
 0x2fc   :  { %v203_v22 = vsel %vm131_vm3, %v200_v20, %v193_v19 }
 0x2fd   :  { %v205_v23 = vadd.f32 %v203_v22, %v182_v21 }
 0x2ff   :  { %207 = vst.msk [vmem:[#allocation5] sm:$0x3] %vm34_vm2, %v205_v23 }
 0x306   :  { %v212_v34 = vld [vmem:[#allocation5] sm:$0x3] }
 0x364   :  { %v172_v29 = vpop.xlane.xlu0 %171 }
 0x365   :  { %v173_v30 = vadd.f32 %v172_v29, %v157_v28 }
 0x367   :  { %175 = vst.msk [vmem:[#allocation4] sm:$0x3] %vm31_vm1, %v173_v30 }
 0x36e   :  { %v213_v31 = vld [vmem:[#allocation4] sm:$0x3] }
 0x36f   :  { %286 = vrcp.f32 %v213_v31 }
 0x375   :  { %v287_v32 = vpop.eup %286 }
 0x376   :  { %217 = vperm.xlu0 %277, %v287_v32  }
 0x3e8   :  { %v218_v35 = vpop.permute.xlu0 %217 }
 0x3e9   :  { %v220_v36 = vmul.f32 %v218_v35, %v212_v34 }
 0x3eb   :  { %270 = vmatmul.msk.f32.vlgmr.msra.gmra.mxu2 %vm45_vm0, %v220_v36 }
 0x46e   :  { %v249_v38 = vpop.f32.mrf.mxu2 }
 0x46f   :  { %v250_v39 = vadd.f32 %v279_v37, %v249_v38 }
 0x471   :  { %252 = vst [vmem:[#allocation6] sm:$0x3] %v250_v39 }
 0x472   :  { %263 = dma.vmem_to_hbm [thread:$0]  %s259_s30, 32, %s261_s10, [#allocation7]  }
 0x473   :  { %312 = dma.done.wait [#allocation7], 32  }
 0x474   :  { %313 = vsyncadd [#allocation7], 4294967264 }
 0x475   :  { %268 = vsyncpa [#allocation7], 1 }

</bundles_post_ra>
